<compile_context>
chip_gen: v5e
topology: v5e:2x2
jax: 0.10.0
libtpu: 0.0.40
codegen_flags: <defaults>
</compile_context>

<pallas_src>
import functools

import jax
import jax.numpy as jnp
from jax import lax
from jax.experimental import pallas as pl
from jax.experimental.pallas import tpu as pltpu


_LN_EPS = 1e-5      # PyTorch nn.LayerNorm default


def _round_down(n, m):
    return (n // m) * m


def _slab_byte_target():
    """Per-generation byte target for the streamed x slab (review: size by bytes)."""
    kind = ""
    try:
        kind = jax.devices()[0].device_kind.lower()
    except Exception:
        pass
    if "v7" in kind or "7x" in kind:
        return 6 * 1024 * 1024      # v7x: ~3.2 TB/s HBM -> larger slabs hide step overhead
    if "v6" in kind:
        return 3 * 1024 * 1024      # v6e: ~1.3-1.4 TB/s
    return 2 * 1024 * 1024          # v5e & default: ~0.8 TB/s


def _fwd_kernel(alpha_ref,                                   # scalar prefetch (SMEM)
                x_ref, w_rep_ref, p_ref, vecs_ref,           # inputs (VMEM)
                out_ref,                                      # output (VMEM)
                acc_ref,                                      # scratch (VMEM)
                *, inv_hw, hw, thw, chunk, nfull, rem, need_mask):
    """One (batch-tile, spatial-tile) grid step.

    x_ref:     [rows=tb*C, thw]  streamed slab of the flattened input
    w_rep_ref: [rows, inter]     fused head weight, replicated per batch tile
    p_ref:     [tb, rows]        0/1 segment-sum matrix (row r belongs to sample r//C)
    vecs_ref:  [3, inter]        packed (bias, gamma, beta)
    acc_ref:   [rows, 128]       lane-wide f32 partial-sum accumulator
    """
    k = pl.program_id(1)

    @pl.when(k == 0)
    def _init():
        acc_ref[...] = jnp.zeros_like(acc_ref)

    # ---- streamed global-average-pool: partial spatial sums of this slab ----
    def _masked(seg, start):
        if not need_mask:
            return seg
        col = k * thw + start + lax.broadcasted_iota(jnp.int32, seg.shape, 1)
        return jnp.where(col < hw, seg, 0.0)

    def _fold128(seg):
        # fold `chunk` lanes into 128 accumulator lanes with pure VALU adds
        part = seg[:, :128]
        for j in range(1, seg.shape[1] // 128):
            part = part + seg[:, j * 128:(j + 1) * 128]
        return part

    if nfull > 0:
        if nfull <= 8:
            # short, fully static unroll (static ref slices)
            for g in range(nfull):
                seg = x_ref[:, g * chunk:(g + 1) * chunk].astype(jnp.float32)
                acc_ref[...] += _fold128(_masked(seg, g * chunk))
        else:
            def _chunk_body(g, carry):
                start = pl.multiple_of(g * chunk, 128)
                seg = x_ref[:, pl.ds(start, chunk)].astype(jnp.float32)
                acc_ref[...] += _fold128(_masked(seg, start))
                return carry
            lax.fori_loop(0, nfull, _chunk_body, 0)

    if rem > 0:
        # remainder only exists in single-spatial-tile mode (thw == hw), so it
        # is never out of bounds and never needs the lane mask.
        tail = x_ref[:, nfull * chunk:nfull * chunk + rem].astype(jnp.float32)
        acc_ref[:, :1] += jnp.sum(tail, axis=-1, keepdims=True)

    # ---- head: fused Linear -> PReLU -> LayerNorm (once per batch tile) ----
    @pl.when(k == pl.num_programs(1) - 1)
    def _finalize():
        # pooled features, still in flattened [tb*C, 1] row order
        mean_col = jnp.sum(acc_ref[...], axis=-1, keepdims=True) * inv_hw   # [rows, 1] f32
        # reshape-free reorg + fused head matmul:
        #   h[t, :] = sum_c mean[t*C + c] * w_fused[c, :]
        #           = ( P @ (mean_col * w_rep) )[t, :]
        tmp = mean_col * w_rep_ref[...].astype(jnp.float32)                 # [rows, inter]
        h = jnp.dot(p_ref[...], tmp, preferred_element_type=jnp.float32)    # [tb, inter]
        h = h + vecs_ref[0:1, :]                                            # + fused bias
        # PReLU (single shared weight, nn.PReLU() default)
        alpha = alpha_ref[0]
        h = jnp.where(h >= 0.0, h, alpha * h)
        # LayerNorm over `inter` (biased variance, eps = 1e-5)
        mu = jnp.mean(h, axis=-1, keepdims=True)
        var = jnp.mean((h - mu) * (h - mu), axis=-1, keepdims=True)
        hn = (h - mu) * lax.rsqrt(var + _LN_EPS)
        out_ref[...] = (hn * vecs_ref[1:2, :] + vecs_ref[2:3, :]).astype(out_ref.dtype)


def classification_model_forward(x, params):
    """x: [B, C, H, W] (f32 or bf16, NCHW).  Returns [B, inter_layer_size] f32."""
    B, C, H, W = x.shape
    hw = H * W
    w_fused = params["w_fused"]                      # [C, inter] bf16
    vecs = params["vecs"]                            # [3, inter] f32 (bias, gamma, beta)
    inter = w_fused.shape[-1]
    itemsize = x.dtype.itemsize
    target = _slab_byte_target()

    # ---- batch tile: keep it small when B is small (no padded rows streamed),
    #      grow it (multiple of 8 -> legal out block) only while the per-step
    #      slab is still below the byte target.
    if B <= 8 or B * C * hw * itemsize <= target:
        tb = B                                        # single batch tile (full-dim block)
    else:
        tb = 8
        while tb * 2 <= B and tb * C * hw * itemsize < target:
            tb *= 2
        if tb >= B:
            tb = B
    grid_b = pl.cdiv(B, tb)
    rows = tb * C

    # ---- spatial (streamed) tile, sized by BYTES; inner chunk keeps vregs bounded
    chunk = max(128, min(2048, ((16384 // max(rows, 1)) // 128) * 128))
    max_elems = max(chunk, target // max(rows * itemsize, 1))
    if hw <= max_elems:
        thw, grid_k = hw, 1                           # whole spatial extent in one slab
    else:
        thw = max(chunk, _round_down(max_elems, chunk))
        grid_k = pl.cdiv(hw, thw)
    need_mask = (grid_k > 1) and (hw % thw != 0)      # ragged tail handled in-kernel
    nfull, rem = thw // chunk, thw % chunk            # rem > 0 only when grid_k == 1

    # ---- dense 2-D presentation of x: [B*C, HW]; free reshape, NO pad copy ----
    x2 = x.reshape(B * C, hw)

    # tiny head operands (off the hot path): replicated fused weight + segment matrix
    w_rep = jnp.tile(w_fused, (tb, 1))                                       # [rows, inter]
    p_mat = (jnp.arange(rows, dtype=jnp.int32)[None, :] // C ==
             jnp.arange(tb, dtype=jnp.int32)[:, None]).astype(jnp.float32)   # [tb, rows]

    # ---- VMEM footprint-derived limit (capped well under v7x's 64 MiB/TC) ----
    slab_bytes = rows * thw * itemsize
    resident_bytes = (rows * inter * w_rep.dtype.itemsize   # w_rep
                      + tb * rows * 4                       # p_mat
                      + 3 * inter * 4)                      # packed vectors
    vmem_need = (2 * slab_bytes                              # double-buffered x stream
                 + 2 * resident_bytes                        # (default double-buffering)
                 + 2 * tb * inter * 4                        # out block
                 + rows * 128 * 4)                           # accumulator scratch
    vmem_limit = int(min(48 * 1024 * 1024, max(vmem_need + (4 << 20), 16 << 20)))

    kernel = functools.partial(
        _fwd_kernel, inv_hw=1.0 / float(hw), hw=hw, thw=thw, chunk=chunk,
        nfull=nfull, rem=rem, need_mask=need_mask)

    cost = pl.CostEstimate(
        flops=B * C * hw + 2 * B * C * inter + 12 * B * inter,
        transcendentals=B,
        bytes_accessed=(B * C * hw * itemsize
                        + rows * inter * w_rep.dtype.itemsize
                        + tb * rows * 4 + 3 * inter * 4 + B * inter * 4),
    )

    out = pl.pallas_call(
        kernel,
        out_shape=jax.ShapeDtypeStruct((B, inter), jnp.float32),
        grid_spec=pltpu.PrefetchScalarGridSpec(
            num_scalar_prefetch=1,            # PReLU alpha -> SMEM scalar
            grid=(grid_b, grid_k),
            in_specs=[
                # streamed dense x slab (double-buffered by the Pallas pipeline)
                pl.BlockSpec((rows, thw), lambda b, k, alpha: (b, k)),
                # resident head operands: constant block index -> stay in VMEM
                pl.BlockSpec((rows, inter), lambda b, k, alpha: (0, 0)),
                pl.BlockSpec((tb, rows), lambda b, k, alpha: (0, 0)),
                pl.BlockSpec((3, inter), lambda b, k, alpha: (0, 0)),
            ],
            out_specs=pl.BlockSpec((tb, inter), lambda b, k, alpha: (b, 0)),
            scratch_shapes=[pltpu.VMEM((rows, 128), jnp.float32)],
        ),
        compiler_params=pltpu.CompilerParams(
            # batch tiles shard across TensorCores; the spatial axis is the
            # streamed reduction and sits last in the grid.
            dimension_semantics=("parallel", "arbitrary"),
            vmem_limit_bytes=vmem_limit,
        ),
        cost_estimate=cost,
    )(params["alpha"], x2, w_rep, p_mat, vecs)

    return out


def init_params(key, c_in, in_features, inter_layer_size):
    """Deterministic synthetic parameters (shapes follow the module __init__)."""
    k1, k2, k3, k4 = jax.random.split(key, 4)
    s_bb = 1.0 / jnp.sqrt(jnp.float32(c_in))
    s_fc = 1.0 / jnp.sqrt(jnp.float32(in_features))
    w_bb = jax.random.uniform(k1, (c_in, in_features), jnp.float32, -s_bb, s_bb)
    b_bb = jax.random.uniform(k2, (1, in_features), jnp.float32, -s_bb, s_bb)
    w_fc = jax.random.uniform(k3, (in_features, inter_layer_size), jnp.float32,
                              -s_fc, s_fc)
    b_fc = jax.random.uniform(k4, (1, inter_layer_size), jnp.float32,
                              -s_fc, s_fc)
    # Two linears with no nonlinearity in between compose exactly: fold them
    # offline into a single [C, inter] weight and [1, inter] bias.
    # NOTE: bf16 weight storage deviates from PyTorch's f32 path (flagged in
    # review); pooled features and all accumulation stay f32.
    w_fused = (w_bb @ w_fc).astype(jnp.bfloat16)
    b_fused = (b_bb @ w_fc + b_fc).astype(jnp.float32)             # [1, inter]
    gamma = jnp.ones((1, inter_layer_size), jnp.float32)
    beta = jnp.zeros((1, inter_layer_size), jnp.float32)
    vecs = jnp.concatenate([b_fused, gamma, beta], axis=0)         # [3, inter]
    return {
        "w_fused": w_fused,
        "vecs": vecs,
        "alpha": jnp.full((1,), 0.25, jnp.float32),                # nn.PReLU() default
    }


def _reference(x, p):
    """Pure-JAX reference (f32 math on the same bf16-valued fused weight)."""
    B, C, H, W = x.shape
    feats = jnp.mean(x.reshape(B, C, H * W).astype(jnp.float32), axis=-1)
    w = p["w_fused"].astype(jnp.float32)
    h = feats @ w + p["vecs"][0:1]
    h = jnp.where(h >= 0, h, p["alpha"][0] * h)
    mu = jnp.mean(h, axis=-1, keepdims=True)
    var = jnp.mean((h - mu) ** 2, axis=-1, keepdims=True)
    return (h - mu) / jnp.sqrt(var + _LN_EPS) * p["vecs"][1:2] + p["vecs"][2:3]


if __name__ == "__main__":
    B, C, H, W = 2, 4, 16, 16
    in_features = 32
    inter_layer_size = 128   # module default is 512; kept small & lane-dense (x128)

    key = jax.random.PRNGKey(0)
    kx, kp = jax.random.split(key)
    x = jax.random.normal(kx, (B, C, H, W), jnp.float32)
    params = init_params(kp, C, in_features, inter_layer_size)

    out = classification_model_forward(x, params)
    out = jax.block_until_ready(out)

    ref = _reference(x, params)
    assert out.shape == (B, inter_layer_size)
    max_err = float(jnp.max(jnp.abs(out - ref)))
    assert jnp.allclose(out, ref, atol=1e-2, rtol=1e-2), max_err

    print("KERNEL_OK")
</pallas_src>

<mosaic_0001>
module attributes {stable_mosaic.version = 11 : i64} {
  func.func @_fwd_kernel(%arg0: i32, %arg1: i32, %arg2: memref<1xf32, #tpu.memory_space<smem>>, %arg3: memref<8x256xf32, #tpu.memory_space<vmem>>, %arg4: memref<8x128xbf16, #tpu.memory_space<vmem>>, %arg5: memref<2x8xf32, #tpu.memory_space<vmem>>, %arg6: memref<3x128xf32, #tpu.memory_space<vmem>>, %arg7: memref<2x128xf32, #tpu.memory_space<vmem>>, %arg8: memref<8x128xf32, #tpu.memory_space<vmem>>) attributes {dimension_semantics = [#tpu.dimension_semantics<parallel>, #tpu.dimension_semantics<arbitrary>], iteration_bounds = array<i64: 1, 1>, scalar_prefetch = 1 : i64, scratch_operands = 1 : i64, tpu.core_type = #tpu.core_type<tc>, window_params = [{transform_indices = @transform_0, window_bounds = array<i64: 8, 256>}, {pipeline_mode = #tpu.pipeline_mode<synchronous>, transform_indices = @transform_1, window_bounds = array<i64: 8, 128>}, {pipeline_mode = #tpu.pipeline_mode<synchronous>, transform_indices = @transform_2, window_bounds = array<i64: 2, 8>}, {pipeline_mode = #tpu.pipeline_mode<synchronous>, transform_indices = @transform_3, window_bounds = array<i64: 3, 128>}, {transform_indices = @transform_4, window_bounds = array<i64: 2, 128>}]} {
    %c0_i32 = arith.constant 0 : i32
    %0 = arith.cmpi eq, %arg1, %c0_i32 : i32
    %1 = arith.extui %0 : i1 to i32
    %c0_i32_0 = arith.constant 0 : i32
    %2 = arith.cmpi ne, %1, %c0_i32_0 : i32
    scf.if %2 {
      %cst_8 = arith.constant 0.000000e+00 : f32
      %12 = vector.broadcast %cst_8 : f32 to vector<8x128xf32>
      %c0_9 = arith.constant 0 : index
      %c0_10 = arith.constant 0 : index
      %13 = vector.load %arg8[%c0_9, %c0_10] : memref<8x128xf32, #tpu.memory_space<vmem>>, vector<8x128xf32>
      tpu.vector_store %arg8[%c0_9, %c0_10], %12 {strides = array<i32>} : memref<8x128xf32, #tpu.memory_space<vmem>>, vector<8x128xf32>,
    } else {
    }
    %c0 = arith.constant 0 : index
    %c0_1 = arith.constant 0 : index
    %3 = vector.load %arg3[%c0, %c0_1] : memref<8x256xf32, #tpu.memory_space<vmem>>, vector<8x256xf32>
    %c0_2 = arith.constant 0 : index
    %c0_3 = arith.constant 0 : index
    %4 = vector.load %arg8[%c0_2, %c0_3] : memref<8x128xf32, #tpu.memory_space<vmem>>, vector<8x1xf32>
    %cst = arith.constant dense<0.000000e+00> : vector<8xf32>
    %5 = vector.multi_reduction <add>, %3, %cst [1] : vector<8x256xf32> to vector<8xf32>
    %6 = vector.shape_cast %5 : vector<8xf32> to vector<8x1xf32>
    %7 = arith.addf %4, %6 : vector<8x1xf32>
    %c0_4 = arith.constant 0 : index
    %c0_5 = arith.constant 0 : index
    %8 = vector.load %arg8[%c0_4, %c0_5] : memref<8x128xf32, #tpu.memory_space<vmem>>, vector<8x1xf32>
    tpu.vector_store %arg8[%c0_4, %c0_5], %7 {strides = array<i32>} : memref<8x128xf32, #tpu.memory_space<vmem>>, vector<8x1xf32>,
    %c0_i32_6 = arith.constant 0 : i32
    %9 = arith.cmpi eq, %arg1, %c0_i32_6 : i32
    %10 = arith.extui %9 : i1 to i32
    %c0_i32_7 = arith.constant 0 : i32
    %11 = arith.cmpi ne, %10, %c0_i32_7 : i32
    scf.if %11 {
      %c0_8 = arith.constant 0 : index
      %c0_9 = arith.constant 0 : index
      %12 = vector.load %arg8[%c0_8, %c0_9] : memref<8x128xf32, #tpu.memory_space<vmem>>, vector<8x128xf32>
      %cst_10 = arith.constant dense<0.000000e+00> : vector<8xf32>
      %13 = vector.multi_reduction <add>, %12, %cst_10 [1] : vector<8x128xf32> to vector<8xf32>
      %14 = vector.shape_cast %13 : vector<8xf32> to vector<8x1xf32>
      %cst_11 = arith.constant 3.906250e-03 : f32
      %15 = vector.broadcast %cst_11 : f32 to vector<8x1xf32>
      %16 = arith.mulf %14, %15 : vector<8x1xf32>
      %c0_12 = arith.constant 0 : index
      %c0_13 = arith.constant 0 : index
      %17 = vector.load %arg4[%c0_12, %c0_13] : memref<8x128xbf16, #tpu.memory_space<vmem>>, vector<8x128xbf16>
      %18 = arith.extf %17 : vector<8x128xbf16> to vector<8x128xf32>
      %19 = vector.broadcast %16 : vector<8x1xf32> to vector<8x128xf32>
      %20 = arith.mulf %19, %18 : vector<8x128xf32>
      %c0_14 = arith.constant 0 : index
      %c0_15 = arith.constant 0 : index
      %21 = vector.load %arg5[%c0_14, %c0_15] : memref<2x8xf32, #tpu.memory_space<vmem>>, vector<2x8xf32>
      %cst_16 = arith.constant dense<0.000000e+00> : vector<2x128xf32>
      %22 = tpu.matmul %21, %20, %cst_16 {dimension_numbers = #tpu.dot_dimension_numbers<[1], [0], [0], [1], [0, 0, 1, 1], [], []>} : vector<2x8xf32>, vector<8x128xf32>, vector<2x128xf32> -> vector<2x128xf32>
      %c0_17 = arith.constant 0 : index
      %c0_18 = arith.constant 0 : index
      %23 = vector.load %arg6[%c0_17, %c0_18] : memref<3x128xf32, #tpu.memory_space<vmem>>, vector<1x128xf32>
      %24 = vector.broadcast %23 : vector<1x128xf32> to vector<2x128xf32>
      %25 = arith.addf %22, %24 : vector<2x128xf32>
      %c0_19 = arith.constant 0 : index
      %26 = memref.load %arg2[%c0_19] : memref<1xf32, #tpu.memory_space<smem>>
      %cst_20 = arith.constant 0.000000e+00 : f32
      %27 = vector.broadcast %cst_20 : f32 to vector<2x128xf32>
      %28 = arith.cmpf oge, %25, %27 : vector<2x128xf32>
      %29 = vector.broadcast %26 : f32 to vector<2x128xf32>
      %30 = arith.mulf %29, %25 : vector<2x128xf32>
      %31 = arith.select %28, %25, %30 : vector<2x128xi1>, vector<2x128xf32>
      %cst_21 = arith.constant dense<0.000000e+00> : vector<2xf32>
      %32 = vector.multi_reduction <add>, %31, %cst_21 [1] : vector<2x128xf32> to vector<2xf32>
      %33 = vector.shape_cast %32 : vector<2xf32> to vector<2x1xf32>
      %cst_22 = arith.constant 1.280000e+02 : f32
      %34 = vector.broadcast %cst_22 : f32 to vector<2x1xf32>
      %35 = arith.divf %33, %34 : vector<2x1xf32>
      %36 = vector.broadcast %35 : vector<2x1xf32> to vector<2x128xf32>
      %37 = arith.subf %31, %36 : vector<2x128xf32>
      %38 = vector.broadcast %35 : vector<2x1xf32> to vector<2x128xf32>
      %39 = arith.subf %31, %38 : vector<2x128xf32>
      %40 = arith.mulf %37, %39 : vector<2x128xf32>
      %cst_23 = arith.constant dense<0.000000e+00> : vector<2xf32>
      %41 = vector.multi_reduction <add>, %40, %cst_23 [1] : vector<2x128xf32> to vector<2xf32>
      %42 = vector.shape_cast %41 : vector<2xf32> to vector<2x1xf32>
      %cst_24 = arith.constant 1.280000e+02 : f32
      %43 = vector.broadcast %cst_24 : f32 to vector<2x1xf32>
      %44 = arith.divf %42, %43 : vector<2x1xf32>
      %45 = vector.broadcast %35 : vector<2x1xf32> to vector<2x128xf32>
      %46 = arith.subf %31, %45 : vector<2x128xf32>
      %cst_25 = arith.constant 9.99999974E-6 : f32
      %47 = vector.broadcast %cst_25 : f32 to vector<2x1xf32>
      %48 = arith.addf %44, %47 : vector<2x1xf32>
      %49 = math.rsqrt %48 : vector<2x1xf32>
      %50 = vector.broadcast %49 : vector<2x1xf32> to vector<2x128xf32>
      %51 = arith.mulf %46, %50 : vector<2x128xf32>
      %c1 = arith.constant 1 : index
      %c0_26 = arith.constant 0 : index
      %52 = vector.load %arg6[%c1, %c0_26] : memref<3x128xf32, #tpu.memory_space<vmem>>, vector<1x128xf32>
      %53 = vector.broadcast %52 : vector<1x128xf32> to vector<2x128xf32>
      %54 = arith.mulf %51, %53 : vector<2x128xf32>
      %c2 = arith.constant 2 : index
      %c0_27 = arith.constant 0 : index
      %55 = vector.load %arg6[%c2, %c0_27] : memref<3x128xf32, #tpu.memory_space<vmem>>, vector<1x128xf32>
      %56 = vector.broadcast %55 : vector<1x128xf32> to vector<2x128xf32>
      %57 = arith.addf %54, %56 : vector<2x128xf32>
      %c0_28 = arith.constant 0 : index
      %c0_29 = arith.constant 0 : index
      %58 = vector.load %arg7[%c0_28, %c0_29] : memref<2x128xf32, #tpu.memory_space<vmem>>, vector<2x128xf32>
      tpu.vector_store %arg7[%c0_28, %c0_29], %57 {strides = array<i32>} : memref<2x128xf32, #tpu.memory_space<vmem>>, vector<2x128xf32>,
    } else {
    }
    return
  }
  func.func @transform_0(%arg0: i32, %arg1: i32, %arg2: memref<1xf32, #tpu.memory_space<smem>>) -> (i32, i32) {
    %c0_i32 = arith.constant 0 : i32
    return %arg0, %arg1 : i32, i32
  }
  func.func @transform_1(%arg0: i32, %arg1: i32, %arg2: memref<1xf32, #tpu.memory_space<smem>>) -> (i32, i32) {
    %c0_i32 = arith.constant 0 : i32
    %c0_i32_0 = arith.constant 0 : i32
    %c0_i32_1 = arith.constant 0 : i32
    return %c0_i32, %c0_i32_0 : i32, i32
  }
  func.func @transform_2(%arg0: i32, %arg1: i32, %arg2: memref<1xf32, #tpu.memory_space<smem>>) -> (i32, i32) {
    %c0_i32 = arith.constant 0 : i32
    %c0_i32_0 = arith.constant 0 : i32
    %c0_i32_1 = arith.constant 0 : i32
    return %c0_i32, %c0_i32_0 : i32, i32
  }
  func.func @transform_3(%arg0: i32, %arg1: i32, %arg2: memref<1xf32, #tpu.memory_space<smem>>) -> (i32, i32) {
    %c0_i32 = arith.constant 0 : i32
    %c0_i32_0 = arith.constant 0 : i32
    %c0_i32_1 = arith.constant 0 : i32
    return %c0_i32, %c0_i32_0 : i32, i32
  }
  func.func @transform_4(%arg0: i32, %arg1: i32, %arg2: memref<1xf32, #tpu.memory_space<smem>>) -> (i32, i32) {
    %c0_i32 = arith.constant 0 : i32
    %c0_i32_0 = arith.constant 0 : i32
    return %arg0, %c0_i32 : i32, i32
  }
}

</mosaic_0001>

<bundles_post_ra>
// kernel: tpu_custom_call.1
= control target key start
LH: loop header
LB: loop body
LE: loop exit
PB: predicated region body
PF: predicated region fallthrough
CT: control target
= control target key end

     0   :  { %11 = vsyncpa [#allocation6], 0  ;;  %s350_s0 = inlined_call_operand.<no memory space> [shape: f32[1], index: 0, kind: input, shape index: {}]   ;;  %s351_s1 = inlined_call_operand.hbm [shape: f32[8,256], index: 1, kind: input, shape index: {}]   ;;  %s352_s2 = inlined_call_operand.hbm [shape: bf16[8,128], index: 2, kind: input, shape index: {}]   ;;  %s353_s3 = inlined_call_operand.hbm [shape: f32[2,8], index: 3, kind: input, shape index: {}]   ;;  %s354_s4 = inlined_call_operand.vmem [shape: f32[3,128], index: 4, kind: input, shape index: {}]   ;;  %s355_s5 = inlined_call_operand.hbm [shape: f32[2,128], index: 5, kind: output, shape index: {}]  }
   0x1   :  { %12 = vsyncpa [#allocation9], 0  ;;  %s30_s20 = sshll.u32 %s352_s2, 4  ;;  %s31_s20 = int_to_ptr.hbm [resolvable:$true] %s30_s20 }
   0x2   :  { %13 = vsyncpa [#allocation7], 0  ;;  %s288_s21 = smov [#allocation8]   ;;  %s19_s25 = sshll.u32 %s351_s1, 4  ;;  %s20_s25 = int_to_ptr.hbm [resolvable:$true] %s19_s25 }
   0x3   :  { %s32_s22 = sshll.u32 %s288_s21, 4  ;;  %s289_s26 = smov [#allocation5]   ;;  %s33_s22 = int_to_ptr.vmem [resolvable:$true] %s32_s22 }
   0x4   :  { %35 = dma.hbm_to_vmem [thread:$0]  %s31_s20, 64, %s33_s22, [#allocation9]  }
   0x5   :  { %s21_s27 = sshll.u32 %s289_s26, 4  ;;  %s41_s30 = sshll.u32 %s353_s3, 4  ;;  %s22_s27 = int_to_ptr.vmem [resolvable:$true] %s21_s27  ;;  %s42_s30 = int_to_ptr.hbm [resolvable:$true] %s41_s30 }
   0x6   :  { %24 = dma.hbm_to_vmem [thread:$0]  %s20_s25, 256, %s22_s27, [#allocation6]  }
   0x7   :  { %s290_s2 = smov [#allocation10]  }
   0x8   :  { %s43_s6 = sshll.u32 %s290_s2, 4  ;;  %s44_s6 = int_to_ptr.vmem [resolvable:$true] %s43_s6 }
   0x9   :  { %46 = dma.hbm_to_vmem [thread:$0]  %s42_s30, 32, %s44_s6, [#allocation9]  }
   0xa   :  { %282 = dma.done.wait [#allocation6], 256  }
   0xb   :  { %283 = vsyncadd [#allocation6], 4294967040 }
   0xc   :  { %284 = dma.done.wait [#allocation9], 96  }
   0xd   :  { %285 = vsyncadd [#allocation9], 4294967200  ;;  %v291_v0 = vmov 0.0   ;;  %v66_v1 = vld [vmem:[#allocation5] sm:$0xff]  ;;  %v67_v2 = vld [vmem:[#allocation5 + $0x8] sm:$0xff]  ;;  %vm73_vm0 = vcmask 7168   ;;  %v114_v14 = vstv %s350_s0 }
   0xe   :  { %65 = vst [vmem:[#allocation2] sm:$0xff] %v291_v0  ;;  %v69_v3 = vadd.f32 %v67_v2, %v66_v1  ;;  %v82_v6 = vld [vmem:[#allocation8] sm:$0xf]  ;;  %v85_v11 = vld [vmem:[#allocation10] sm:$0x3]  ;;  %vm88_vm1 = vcmask 64512  }
   0xf   :  { %v83_v7 = vunpack.c.l.bf16 %v82_v6  ;;  %v179_v12 = vld [vmem:[%s354_s4] ss:$0 sm:$0xff]  ;;  %vm117_vm3 = vcmask 1041408   ;;  %v292_v19 = vmov 128.0   ;;  %v180_v40 = vld [vmem:[%s354_s4 + $0x1] ss:$0 sm:$0xff] }
  0x10   :  { %70 = vadd.xlane.f32.xlu0 %v69_v3  ;;  %182 = vrcp.f32 %v292_v19  ;;  %v181_v43 = vld [vmem:[%s354_s4 + $0x2] ss:$0 sm:$0xff]  ;;  %s293_s12 = smov [#allocation11]   ;;  %s161_s16 = sshll.u32 %s355_s5, 4  ;;  %s162_s16 = int_to_ptr.hbm [resolvable:$true] %s161_s16 }
  0x11   :  { %s159_s13 = sshll.u32 %s293_s12, 4  ;;  %s160_s13 = int_to_ptr.vmem [resolvable:$true] %s159_s13 }
  0x16   :  { %v183_v20 = vpop.eup %182 }
  0x17   :  { %v122_v21 = vmul.f32 128.0, %v183_v20  ;;  %vm126_vm4 = vweird.f32 %v183_v20 }
  0x19   :  { %v123_v22 = vsub.f32 1.0, %v122_v21 }
  0x1b   :  { %v124_v23 = vmul.f32 %v183_v20, %v123_v22 }
  0x1d   :  { %v125_v24 = vadd.f32 %v183_v20, %v124_v23 }
  0x1f   :  { %v127_v25 = vsel %vm126_vm4, %v183_v20, %v125_v24 }
  0x83   :  { %v71_v4 = vpop.xlane.xlu0 %70 }
  0x84   :  { %74 = vst.msk [vmem:[#allocation2] sm:$0xff] %vm73_vm0, %v71_v4 }
  0x8b   :  { %v78_v5 = vld [vmem:[#allocation2] sm:$0xff] }
  0x8c   :  { %79 = vadd.xlane.f32.xlu0 %v78_v5 }
  0xff   :  { %v80_v8 = vpop.xlane.xlu0 %79 }
 0x100   :  { %v81_v9 = vmul.f32 0.00390625, %v80_v8 }
 0x102   :  { %v84_v10 = vmul.f32 %v83_v7, %v81_v9 }
 0x104   :  { %107 = vmatpush.msra.mxu0 %v84_v10 }
 0x105   :  { %172 = vmatmul.msk.f32.vlgmr.msra.gmra.mxu0 %vm88_vm1, %v85_v11 }
 0x182   :  { %v109_v13 = vpop.f32.mrf.mxu0 }
 0x183   :  { %v110_v15 = vadd.f32 %v179_v12, %v109_v13 }
 0x185   :  { %v115_v16 = vmul.f32 %v114_v14, %v110_v15  ;;  %vm113_vm2 = vcmp.ge.f32.partialorder %v110_v15, 0.0 }
 0x187   :  { %v116_v17 = vsel %vm113_vm2, %v110_v15, %v115_v16 }
 0x188   :  { %v118_v18 = vsel %vm117_vm3, %v116_v17, 0.0 }
 0x189   :  { %119 = vadd.xlane.f32.xlu1 %v118_v18 }
 0x1fc   :  { %v120_v26 = vpop.xlane.xlu1 %119 }
 0x1fd   :  { %v128_v27 = vmul.f32 %v127_v25, %v120_v26 }
 0x1ff   :  { %v129_v28 = vsub.f32 %v116_v17, %v128_v27 }
 0x201   :  { %v130_v29 = vmul.f32 %v129_v28, %v129_v28 }
 0x203   :  { %v131_v30 = vsel %vm117_vm3, %v130_v29, 0.0 }
 0x204   :  { %132 = vadd.xlane.f32.xlu1 %v131_v30 }
 0x277   :  { %v133_v31 = vpop.xlane.xlu1 %132 }
 0x278   :  { %v134_v32 = vmul.f32 %v133_v31, %v127_v25 }
 0x27a   :  { %v135_v33 = vadd.f32 1e-05, %v134_v32 }
 0x27c   :  { %184 = vrsqrt.f32 %v135_v33  ;;  %vm142_vm6 = vweird.f32 %v135_v33 }
 0x282   :  { %v185_v34 = vpop.eup %184 }
 0x283   :  { %v137_v35 = vmul.f32 %v185_v34, %v135_v33  ;;  %vm143_vm5 = vweird.f32 %v185_v34 }
 0x284   :  { %vm144_vm7 = vmor %vm142_vm6, %vm143_vm5 }
 0x285   :  { %v138_v36 = vmul.f32 %v185_v34, %v137_v35 }
 0x287   :  { %v139_v37 = vmul.f32 0.5, %v138_v36 }
 0x289   :  { %v140_v38 = vsub.f32 1.5, %v139_v37 }
 0x28b   :  { %v141_v39 = vmul.f32 %v185_v34, %v140_v38 }
 0x28d   :  { %v145_v41 = vsel %vm144_vm7, %v185_v34, %v141_v39 }
 0x28e   :  { %v146_v42 = vmul.f32 %v145_v41, %v129_v28 }
 0x290   :  { %v149_v44 = vmul.f32 %v180_v40, %v146_v42 }
 0x292   :  { %v152_v45 = vadd.f32 %v181_v43, %v149_v44 }
 0x294   :  { %153 = vst [vmem:[#allocation11] sm:$0x3] %v152_v45 }
 0x295   :  { %164 = dma.vmem_to_hbm [thread:$0]  %s160_s13, 32, %s162_s16, [#allocation7]  }
 0x296   :  { %286 = dma.done.wait [#allocation7], 32  }
 0x297   :  { %287 = vsyncadd [#allocation7], 4294967264 }
 0x298   :  { %169 = vsyncpa [#allocation6], 1 }
 0x299   :  { %170 = vsyncpa [#allocation9], 1 }
 0x29a   :  { %171 = vsyncpa [#allocation7], 1 }

</bundles_post_ra>
